<compile_context>
chip_gen: v7x
topology: tpu7x:2x2x1
jax: 0.10.0
libtpu: 0.0.40
codegen_flags: <defaults>
</compile_context>

<pallas_src>
import jax
import jax.numpy as jnp
from jax.experimental import pallas as pl
from jax.experimental.pallas import tpu as pltpu

INPUT_DIM = 8
HIDDEN_DIM1 = 64
HIDDEN_DIM2 = 32


def _round_up(n, m):
    return ((n + m - 1) // m) * m


def mlp_kernel(x_ref, w1_ref, b1_ref, w2_ref, b2_ref, w3_ref, b3_ref, o_ref):
    # x_ref:  (D,  bt)   bf16 (or f32)   batch on the lane axis
    # w1_ref: (H1, D)    bf16 (or f32)
    # b1_ref: (H1, 1)    f32
    # w2_ref: (H2, H1)   bf16 (or f32)
    # b2_ref: (H2, 1)    f32
    # w3_ref: (H2, 1)    f32             fc3 weights as a column (VPU epilogue)
    # b3_ref: (1,)       f32 scalar in SMEM
    # o_ref:  (1,  bt)   f32

    # fc1 + ReLU  (MXU, f32 accumulation)
    h1 = jnp.dot(w1_ref[...], x_ref[...], preferred_element_type=jnp.float32)
    h1 = jnp.maximum(h1 + b1_ref[...], 0.0)                            # (H1, bt) f32

    # fc2 + ReLU  (MXU, f32 accumulation)
    h2 = jnp.dot(w2_ref[...], h1.astype(w2_ref.dtype),
                 preferred_element_type=jnp.float32)
    h2 = jnp.maximum(h2 + b2_ref[...], 0.0)                            # (H2, bt) f32

    # fc3: single output feature -> keep it off the MXU.
    # VPU broadcast-multiply + sublane reduction (XLU), free alongside the matmuls.
    out = jnp.sum(w3_ref[...] * h2, axis=0, keepdims=True) + b3_ref[0]  # (1, bt) f32
    o_ref[...] = out.astype(o_ref.dtype)


def mlp_forward(x, params, *, batch_tile=2048, use_bf16=True):
    """x: (B, D) f32; params in PyTorch nn.Linear layout. Returns (B, 1) f32."""
    w1, b1, w2, b2, w3, b3 = params
    B, D = x.shape
    H1 = w1.shape[0]
    H2 = w2.shape[0]
    assert w3.shape[0] == 1, "fc3 must have a single output feature"

    # Lane-aligned batch tile: at least 128 lanes; whole batch in one step when small.
    bt = max(128, min(_round_up(batch_tile, 128), _round_up(B, 128)))
    B_pad = _round_up(B, bt)
    grid = (B_pad // bt,)

    mm_dtype = jnp.bfloat16 if use_bf16 else jnp.float32

    # Transpose so batch sits on the 128-lane axis; zero-pad only when required.
    x_t = x.T.astype(mm_dtype)                          # (D, B)
    if B_pad != B:
        x_t = jnp.zeros((D, B_pad), mm_dtype).at[:, :B].set(x_t)

    w1_k = w1.astype(mm_dtype)                          # (H1, D)
    w2_k = w2.astype(mm_dtype)                          # (H2, H1)
    b1_k = b1.reshape(H1, 1).astype(jnp.float32)        # (H1, 1)
    b2_k = b2.reshape(H2, 1).astype(jnp.float32)        # (H2, 1)
    w3_k = w3.reshape(H2, 1).astype(jnp.float32)        # (H2, 1)  column for VPU epilogue
    b3_k = b3.reshape(1).astype(jnp.float32)            # (1,)     SMEM scalar

    full2d = lambda shape: pl.BlockSpec(shape, lambda i: (0, 0))

    out_t = pl.pallas_call(
        mlp_kernel,
        out_shape=jax.ShapeDtypeStruct((1, B_pad), jnp.float32),
        grid_spec=pltpu.PrefetchScalarGridSpec(
            num_scalar_prefetch=0,
            grid=grid,
            in_specs=[
                pl.BlockSpec((D, bt), lambda i: (0, i)),   # x^T tile, batch on lanes
                full2d((H1, D)),                           # w1 (resident)
                full2d((H1, 1)),                           # b1
                full2d((H2, H1)),                          # w2
                full2d((H2, 1)),                           # b2
                full2d((H2, 1)),                           # w3 column
                pl.BlockSpec(memory_space=pltpu.MemorySpace.SMEM),  # b3 scalar
            ],
            out_specs=pl.BlockSpec((1, bt), lambda i: (0, i)),      # lane-dense output
        ),
        compiler_params=pltpu.CompilerParams(
            dimension_semantics=("parallel",),
        ),
    )(x_t, w1_k, b1_k, w2_k, b2_k, w3_k, b3_k)

    # Back to PyTorch-style (B, 1), dropping any batch padding.
    return out_t[0, :B].reshape(B, 1)


def init_params(key, input_dim, h1, h2):
    """PyTorch nn.Linear default init: U(-1/sqrt(fan_in), 1/sqrt(fan_in)), weight (out, in)."""
    ks = jax.random.split(key, 6)

    def linear(kw, kb, fan_in, fan_out):
        bound = float(fan_in) ** -0.5
        w = jax.random.uniform(kw, (fan_out, fan_in), jnp.float32, -bound, bound)
        b = jax.random.uniform(kb, (fan_out,), jnp.float32, -bound, bound)
        return w, b

    w1, b1 = linear(ks[0], ks[1], input_dim, h1)
    w2, b2 = linear(ks[2], ks[3], h1, h2)
    w3, b3 = linear(ks[4], ks[5], h2, 1)
    return (w1, b1, w2, b2, w3, b3)


def mlp_ref_f32(x, params):
    """Pure-f32 reference (exact PyTorch forward semantics)."""
    w1, b1, w2, b2, w3, b3 = params
    h1 = jnp.maximum(x @ w1.T + b1, 0.0)
    h2 = jnp.maximum(h1 @ w2.T + b2, 0.0)
    return h2 @ w3.T + b3


def mlp_ref_matched(x, params, use_bf16=True):
    """Reference with the same numerics as the kernel (bf16 matmuls, f32 accumulation)."""
    w1, b1, w2, b2, w3, b3 = params
    dt = jnp.bfloat16 if use_bf16 else jnp.float32
    h1 = jnp.dot(x.astype(dt), w1.astype(dt).T, preferred_element_type=jnp.float32) + b1
    h1 = jnp.maximum(h1, 0.0)
    h2 = jnp.dot(h1.astype(dt), w2.astype(dt).T, preferred_element_type=jnp.float32) + b2
    h2 = jnp.maximum(h2, 0.0)
    return jnp.sum(h2 * w3, axis=1, keepdims=True) + b3


if __name__ == "__main__":
    key = jax.random.PRNGKey(0)
    kx, kp = jax.random.split(key)

    batch = 16
    x = jax.random.normal(kx, (batch, INPUT_DIM), jnp.float32)
    params = init_params(kp, INPUT_DIM, HIDDEN_DIM1, HIDDEN_DIM2)

    out = mlp_forward(x, params)          # bf16 matmuls, f32 accumulation/epilogue
    out = jax.block_until_ready(out)
    assert out.shape == (batch, 1), out.shape

    # Exact check vs a reference using the same bf16/f32-acc numerics as the kernel.
    ref_matched = mlp_ref_matched(x, params, use_bf16=True)
    assert jnp.allclose(out, ref_matched, atol=1e-4, rtol=1e-4), \
        "mismatch vs numerics-matched reference"

    # Loose check vs the pure-f32 PyTorch-equivalent forward (bf16 quantization error only).
    ref_f32 = mlp_ref_f32(x, params)
    assert jnp.allclose(out, ref_f32, atol=3e-2, rtol=3e-2), \
        "mismatch vs f32 reference"

    print("KERNEL_OK")
</pallas_src>

<mosaic_0001>
module attributes {stable_mosaic.version = 11 : i64} {
  func.func @mlp_kernel(%arg0: i32, %arg1: memref<8x128xbf16, #tpu.memory_space<vmem>>, %arg2: memref<64x8xbf16, #tpu.memory_space<vmem>>, %arg3: memref<64x1xf32, #tpu.memory_space<vmem>>, %arg4: memref<32x64xbf16, #tpu.memory_space<vmem>>, %arg5: memref<32x1xf32, #tpu.memory_space<vmem>>, %arg6: memref<32x1xf32, #tpu.memory_space<vmem>>, %arg7: memref<1xf32, #tpu.memory_space<smem>>, %arg8: memref<1x128xf32, #tpu.memory_space<vmem>>) attributes {dimension_semantics = [#tpu.dimension_semantics<parallel>], iteration_bounds = array<i64: 1>, scalar_prefetch = 0 : i64, scratch_operands = 0 : i64, tpu.core_type = #tpu.core_type<tc>, window_params = [{transform_indices = @transform_0, window_bounds = array<i64: 8, 128>}, {pipeline_mode = #tpu.pipeline_mode<synchronous>, transform_indices = @transform_1, window_bounds = array<i64: 64, 8>}, {pipeline_mode = #tpu.pipeline_mode<synchronous>, transform_indices = @transform_2, window_bounds = array<i64: 64, 1>}, {pipeline_mode = #tpu.pipeline_mode<synchronous>, transform_indices = @transform_3, window_bounds = array<i64: 32, 64>}, {pipeline_mode = #tpu.pipeline_mode<synchronous>, transform_indices = @transform_4, window_bounds = array<i64: 32, 1>}, {pipeline_mode = #tpu.pipeline_mode<synchronous>, transform_indices = @transform_5, window_bounds = array<i64: 32, 1>}, {transform_indices = @transform_6, window_bounds = array<i64: 1>}, {transform_indices = @transform_7, window_bounds = array<i64: 1, 128>}]} {
    %c0 = arith.constant 0 : index
    %c0_0 = arith.constant 0 : index
    %0 = vector.load %arg2[%c0, %c0_0] : memref<64x8xbf16, #tpu.memory_space<vmem>>, vector<64x8xbf16>
    %c0_1 = arith.constant 0 : index
    %c0_2 = arith.constant 0 : index
    %1 = vector.load %arg1[%c0_1, %c0_2] : memref<8x128xbf16, #tpu.memory_space<vmem>>, vector<8x128xbf16>
    %cst = arith.constant dense<0.000000e+00> : vector<64x128xf32>
    %2 = tpu.matmul %0, %1, %cst {dimension_numbers = #tpu.dot_dimension_numbers<[1], [0], [0], [1], [0, 0, 1, 1], [], []>} : vector<64x8xbf16>, vector<8x128xbf16>, vector<64x128xf32> -> vector<64x128xf32>
    %c0_3 = arith.constant 0 : index
    %c0_4 = arith.constant 0 : index
    %3 = vector.load %arg3[%c0_3, %c0_4] : memref<64x1xf32, #tpu.memory_space<vmem>>, vector<64x1xf32>
    %4 = vector.broadcast %3 : vector<64x1xf32> to vector<64x128xf32>
    %5 = arith.addf %2, %4 : vector<64x128xf32>
    %cst_5 = arith.constant 0.000000e+00 : f32
    %6 = vector.broadcast %cst_5 : f32 to vector<64x128xf32>
    %7 = arith.maximumf %5, %6 : vector<64x128xf32>
    %c0_6 = arith.constant 0 : index
    %c0_7 = arith.constant 0 : index
    %8 = vector.load %arg4[%c0_6, %c0_7] : memref<32x64xbf16, #tpu.memory_space<vmem>>, vector<32x64xbf16>
    %9 = arith.truncf %7 : vector<64x128xf32> to vector<64x128xbf16>
    %cst_8 = arith.constant dense<0.000000e+00> : vector<32x128xf32>
    %10 = tpu.matmul %8, %9, %cst_8 {dimension_numbers = #tpu.dot_dimension_numbers<[1], [0], [0], [1], [0, 0, 1, 1], [], []>} : vector<32x64xbf16>, vector<64x128xbf16>, vector<32x128xf32> -> vector<32x128xf32>
    %c0_9 = arith.constant 0 : index
    %c0_10 = arith.constant 0 : index
    %11 = vector.load %arg5[%c0_9, %c0_10] : memref<32x1xf32, #tpu.memory_space<vmem>>, vector<32x1xf32>
    %12 = vector.broadcast %11 : vector<32x1xf32> to vector<32x128xf32>
    %13 = arith.addf %10, %12 : vector<32x128xf32>
    %cst_11 = arith.constant 0.000000e+00 : f32
    %14 = vector.broadcast %cst_11 : f32 to vector<32x128xf32>
    %15 = arith.maximumf %13, %14 : vector<32x128xf32>
    %c0_12 = arith.constant 0 : index
    %c0_13 = arith.constant 0 : index
    %16 = vector.load %arg6[%c0_12, %c0_13] : memref<32x1xf32, #tpu.memory_space<vmem>>, vector<32x1xf32>
    %17 = vector.broadcast %16 : vector<32x1xf32> to vector<32x128xf32>
    %18 = arith.mulf %17, %15 : vector<32x128xf32>
    %cst_14 = arith.constant dense<0.000000e+00> : vector<128xf32>
    %19 = vector.multi_reduction <add>, %18, %cst_14 [0] : vector<32x128xf32> to vector<128xf32>
    %20 = vector.shape_cast %19 : vector<128xf32> to vector<1x128xf32>
    %c0_15 = arith.constant 0 : index
    %21 = memref.load %arg7[%c0_15] : memref<1xf32, #tpu.memory_space<smem>>
    %22 = vector.broadcast %21 : f32 to vector<1x128xf32>
    %23 = arith.addf %20, %22 : vector<1x128xf32>
    %c0_16 = arith.constant 0 : index
    %c0_17 = arith.constant 0 : index
    %24 = vector.load %arg8[%c0_16, %c0_17] : memref<1x128xf32, #tpu.memory_space<vmem>>, vector<1x128xf32>
    tpu.vector_store %arg8[%c0_16, %c0_17], %23 {strides = array<i32>} : memref<1x128xf32, #tpu.memory_space<vmem>>, vector<1x128xf32>,
    return
  }
  func.func @transform_0(%arg0: i32) -> (i32, i32) {
    %c0_i32 = arith.constant 0 : i32
    %c0_i32_0 = arith.constant 0 : i32
    return %c0_i32, %arg0 : i32, i32
  }
  func.func @transform_1(%arg0: i32) -> (i32, i32) {
    %c0_i32 = arith.constant 0 : i32
    %c0_i32_0 = arith.constant 0 : i32
    %c0_i32_1 = arith.constant 0 : i32
    return %c0_i32, %c0_i32_0 : i32, i32
  }
  func.func @transform_2(%arg0: i32) -> (i32, i32) {
    %c0_i32 = arith.constant 0 : i32
    %c0_i32_0 = arith.constant 0 : i32
    %c0_i32_1 = arith.constant 0 : i32
    return %c0_i32, %c0_i32_0 : i32, i32
  }
  func.func @transform_3(%arg0: i32) -> (i32, i32) {
    %c0_i32 = arith.constant 0 : i32
    %c0_i32_0 = arith.constant 0 : i32
    %c0_i32_1 = arith.constant 0 : i32
    return %c0_i32, %c0_i32_0 : i32, i32
  }
  func.func @transform_4(%arg0: i32) -> (i32, i32) {
    %c0_i32 = arith.constant 0 : i32
    %c0_i32_0 = arith.constant 0 : i32
    %c0_i32_1 = arith.constant 0 : i32
    return %c0_i32, %c0_i32_0 : i32, i32
  }
  func.func @transform_5(%arg0: i32) -> (i32, i32) {
    %c0_i32 = arith.constant 0 : i32
    %c0_i32_0 = arith.constant 0 : i32
    %c0_i32_1 = arith.constant 0 : i32
    return %c0_i32, %c0_i32_0 : i32, i32
  }
  func.func @transform_6(%arg0: i32) -> i32 {
    %c0_i32 = arith.constant 0 : i32
    %c0_i32_0 = arith.constant 0 : i32
    return %c0_i32 : i32
  }
  func.func @transform_7(%arg0: i32) -> (i32, i32) {
    %c0_i32 = arith.constant 0 : i32
    %c0_i32_0 = arith.constant 0 : i32
    return %c0_i32, %arg0 : i32, i32
  }
}

</mosaic_0001>

<bundles_post_ra>
// kernel: tpu_custom_call.1
= control target key start
LH: loop header
LB: loop body
LE: loop exit
PB: predicated region body
PF: predicated region fallthrough
CT: control target
= control target key end

     0   :  { %vm119_vm0 = vcmask 1043456   ;;  %vm106_vm1 = vcmask 64512   ;;  %v433_v5 = vmov 0   ;;  %s565_s0 = inlined_call_operand.vmem [shape: bf16[8,128], index: 0, kind: input, shape index: {}]   ;;  %s566_s1 = inlined_call_operand.vmem [shape: bf16[64,8], index: 1, kind: input, shape index: {}]   ;;  %s567_s2 = inlined_call_operand.vmem [shape: f32[64,1], index: 2, kind: input, shape index: {}]   ;;  %s568_s3 = inlined_call_operand.vmem [shape: bf16[32,64], index: 3, kind: input, shape index: {}]   ;;  %s569_s4 = inlined_call_operand.vmem [shape: f32[32,1], index: 4, kind: input, shape index: {}]   ;;  %s570_s5 = inlined_call_operand.vmem [shape: f32[32,1], index: 5, kind: input, shape index: {}]   ;;  %s571_s6 = inlined_call_operand.<no memory space> [shape: f32[1], index: 6, kind: input, shape index: {}]   ;;  %s572_s7 = inlined_call_operand.hbm [shape: f32[1,128], index: 7, kind: output, shape index: {}]  }
   0x1   :  { %v37_v0 = vld [vmem:[%s565_s0] sm:$0xf]  ;;  %v404_v3 = vld [vmem:[%s566_s1 + $0x8] sm:$0xff]   ;;  %v405_v4 = vld [vmem:[%s566_s1 + $0x10] sm:$0xff]   ;;  %401 = vset.pattern.permute.xlu0 %v433_v5  ;;  %402 = vset.pattern.permute.xlu1 %v433_v5 }
   0x2   :  { %v403_v1 = vld [vmem:[%s566_s1] sm:$0xff]   ;;  %398 = vmatprep.subr.msk.bf16.mxu0 %vm119_vm0, %v37_v0  ;;  %v121_v2 = vsel %vm119_vm0, %v37_v0, 0  ;;  %v40_v7 = vld [vmem:[%s567_s2 + $0x10] sm:$0xff]  ;;  %v39_v8 = vld [vmem:[%s567_s2 + $0x8] sm:$0xff] }
   0x3   :  { %377 = vmatpush3.bf16.msra.mxu0 %v121_v2  ;;  %378 = vmatprep.mubr.msk.bf16.mxu0 %vm106_vm1, %v403_v1  ;;  %v38_v6 = vld [vmem:[%s567_s2] sm:$0xff]  ;;  %v41_v9 = vld [vmem:[%s567_s2 + $0x18] sm:$0xff]  ;;  %v43_v12 = vld [vmem:[%s567_s2 + $0x28] sm:$0xff] }
   0x4   :  { %48 = vperm.xlu0 %401, %v38_v6   ;;  %58 = vperm.xlu1 %402, %v40_v7   ;;  %v406_v10 = vld [vmem:[%s566_s1 + $0x18] sm:$0xff]   ;;  %v42_v11 = vld [vmem:[%s567_s2 + $0x20] sm:$0xff] }
   0x6   :  { %379 = vmatmul.mubr.msk.bf16.vlgmr.msra.gmra.mrb[0].mxu0 %vm106_vm1, %v404_v3 }
   0x7   :  { %382 = vmatprep.mubr.msk.bf16.mxu0 %vm106_vm1, %v405_v4 }
   0x8   :  { %53 = vperm.xlu0 %401, %v39_v8   ;;  %63 = vperm.xlu1 %402, %v41_v9  }
   0x9   :  { %13 = vsyncpa [#allocation4], 0  ;;  %v44_v13 = vld [vmem:[%s567_s2 + $0x30] sm:$0xff]  ;;  %v45_v14 = vld [vmem:[%s567_s2 + $0x38] sm:$0xff]  ;;  %vm238_vm2 = vcmask 523264   ;;  %s434_s19 = smov [#allocation3]  }
   0xa   :  { %v204_v15 = vld [vmem:[%s569_s4] sm:$0xff]  ;;  %v205_v16 = vld [vmem:[%s569_s4 + $0x8] sm:$0xff]  ;;  %v206_v17 = vld [vmem:[%s569_s4 + $0x10] sm:$0xff]  ;;  %s345_s20 = sshll.u32 %s434_s19, 4  ;;  %s346_s20 = int_to_ptr.vmem [resolvable:$true] %s345_s20 }
   0xb   :  { %v207_v18 = vld [vmem:[%s569_s4 + $0x18] sm:$0xff]  ;;  %v298_v19 = vld [vmem:[%s570_s5] sm:$0xff]  ;;  %v299_v20 = vld [vmem:[%s570_s5 + $0x8] sm:$0xff]  ;;  %s409_s21 = scalar_lea.vmem %s346_s20, 16  ;;  %s413_s22 = scalar_lea.vmem %s346_s20, 32 }
   0xc   :  { %68 = vperm.xlu0 %401, %v42_v11   ;;  %73 = vperm.xlu1 %402, %v43_v12   ;;  %v300_v21 = vld [vmem:[%s570_s5 + $0x10] sm:$0xff]  ;;  %v301_v22 = vld [vmem:[%s570_s5 + $0x18] sm:$0xff]  ;;  %v407_v23 = vld [vmem:[%s568_s3] sm:$0xff]   ;;  %p410_p0 = scmp.ne.s32.totalorder %s346_s20, %s409_s21  ;;  %p414_p1 = scmp.lt.s32.totalorder %s346_s20, %s346_s20 }
   0xd   :  { %394 = vmatprep.mubr.msk.bf16.mxu1 %vm238_vm2, %v407_v23  ;;  %v408_v60 = vld [vmem:[%s568_s3 + $0x8] sm:$0xff]   ;;  %p415_p2 = scmp.lt.s32.totalorder %s413_s22, %s409_s21 }
   0xe   :  { %383 = vmatmul.mubr.msk.bf16.gmra.mrb[4].mxu0 %vm106_vm1, %v406_v10 }
   0xf   :  { %p416_p3 = por %p415_p2, %p414_p1 }
  0x10   :  { %78 = vperm.xlu0 %401, %v44_v13   ;;  %83 = vperm.xlu1 %402, %v45_v14  }
  0x11   :  { %p417_p4 = pnand %p416_p3, %p410_p0 }
  0x14   :  { %210 = vperm.xlu0 %401, %v204_v15   ;;  %215 = vperm.xlu1 %402, %v205_v16  }
  0x18   :  { %220 = vperm.xlu0 %401, %v206_v17   ;;  %225 = vperm.xlu1 %402, %v207_v18  }
  0x1c   :  { %304 = vperm.xlu0 %401, %v298_v19   ;;  %309 = vperm.xlu1 %402, %v299_v20  }
  0x20   :  { %314 = vperm.xlu0 %401, %v300_v21   ;;  %319 = vperm.xlu1 %402, %v301_v22  }
  0x83   :  { %v49_v24 = vpop.permute.xlu0 %48  ;;  %v59_v25 = vpop.permute.xlu1 %58 }
  0x87   :  { %v54_v26 = vpop.permute.xlu0 %53  ;;  %v64_v27 = vpop.permute.xlu1 %63 }
  0x8b   :  { %v69_v31 = vpop.permute.xlu0 %68  ;;  %v74_v36 = vpop.permute.xlu1 %73 }
  0x8f   :  { %v79_v43 = vpop.permute.xlu0 %78  ;;  %v84_v48 = vpop.permute.xlu1 %83 }
  0x93   :  { %v211_v61 = vpop.permute.xlu0 %210  ;;  %v216_v62 = vpop.permute.xlu1 %215 }
  0x97   :  { %v221_v63 = vpop.permute.xlu0 %220  ;;  %v226_v0 = vpop.permute.xlu1 %225 }
  0x9b   :  { %v305_v6 = vpop.permute.xlu0 %304  ;;  %v310_v11 = vpop.permute.xlu1 %309 }
  0x9f   :  { %v315_v17 = vpop.permute.xlu0 %314  ;;  %v320_v20 = vpop.permute.xlu1 %319 }
  0xd9   :  { %v380_v28 = vpop.f32.mrb[0].mxu0 }
  0xda   :  { %v166_v29 = vadd.f32 %v380_v28, %v59_v25  ;;  %v157_v30 = vpop.f32.mrb[1].mxu0 }
  0xdb   :  { %v158_v32 = vadd.f32 %v157_v30, %v49_v24  ;;  %v381_v33 = vpop.f32.mrb[2].mxu0 }
  0xdc   :  { %v169_v34 = vadd.f32 %v381_v33, %v64_v27  ;;  %v160_v35 = vpop.f32.mrb[3].mxu0  ;;  %v190_v38 = vmax.f32 %v166_v29, 0.0  ;;  %v336_v29 = vstv %s571_s6 }
  0xdd   :  { %v161_v37 = vadd.f32 %v160_v35, %v54_v26  ;;  %v188_v40 = vmax.f32 %v158_v32, 0.0 }
  0xde   :  { %v191_v39 = vmax.f32 %v169_v34, 0.0 }
  0xdf   :  { %v189_v41 = vmax.f32 %v161_v37, 0.0 }
  0xe0   :  { %v201_v42 = vpack.c.bf16 %v191_v39, %v190_v38 }
  0xe1   :  { %v384_v44 = vpop.f32.mrb[4].mxu0  ;;  %v200_v45 = vpack.c.bf16 %v189_v41, %v188_v40 }
  0xe2   :  { %v182_v46 = vadd.f32 %v384_v44, %v79_v43  ;;  %v173_v47 = vpop.f32.mrb[5].mxu0 }
  0xe3   :  { %v174_v49 = vadd.f32 %v173_v47, %v69_v31  ;;  %v385_v50 = vpop.f32.mrb[6].mxu0  ;;  %386 = vmatprep.subr.bf16.mxu1 %v200_v45 }
  0xe4   :  { %v185_v51 = vadd.f32 %v385_v50, %v84_v48  ;;  %v176_v52 = vpop.f32.mrb[7].mxu0  ;;  %387 = vmatpush3.bf16.msra.mxu1 %v200_v45  ;;  %v194_v54 = vmax.f32 %v182_v46, 0.0 }
  0xe5   :  { %v177_v53 = vadd.f32 %v176_v52, %v74_v36  ;;  %388 = vmatprep.subr.bf16.mxu1 %v201_v42  ;;  %v192_v56 = vmax.f32 %v174_v49, 0.0 }
  0xe6   :  { %v195_v55 = vmax.f32 %v185_v51, 0.0 }
  0xe7   :  { %v193_v57 = vmax.f32 %v177_v53, 0.0 }
  0xe8   :  { %v203_v58 = vpack.c.bf16 %v195_v55, %v194_v54  ;;  %389 = vmatpush3.bf16.msra.mxu1 %v201_v42 }
  0xe9   :  { %v202_v59 = vpack.c.bf16 %v193_v57, %v192_v56 }
  0xeb   :  { %390 = vmatprep.subr.bf16.mxu1 %v202_v59 }
  0xec   :  { %391 = vmatpush3.bf16.msra.mxu1 %v202_v59 }
  0xed   :  { %392 = vmatprep.subr.bf16.mxu1 %v203_v58 }
  0xf0   :  { %393 = vmatpush3.bf16.msra.mxu1 %v203_v58 }
  0xf3   :  { %395 = vmatmul.mubr.msk.bf16.vlgmr.msra.gmra.mrb[0].mxu1 %vm238_vm2, %v408_v60 }
 0x1c6   :  { %v396_v1 = vpop.f32.mrb[0].mxu1 }
 0x1c7   :  { %v279_v2 = vpop.f32.mrb[1].mxu1  ;;  %v288_v3 = vadd.f32 %v396_v1, %v221_v63 }
 0x1c8   :  { %v280_v4 = vadd.f32 %v279_v2, %v211_v61  ;;  %v397_v5 = vpop.f32.mrb[2].mxu1 }
 0x1c9   :  { %v282_v7 = vpop.f32.mrb[3].mxu1  ;;  %v291_v9 = vadd.f32 %v397_v5, %v226_v0  ;;  %v296_v12 = vmax.f32 %v288_v3, 0.0 }
 0x1ca   :  { %v294_v8 = vmax.f32 %v280_v4, 0.0  ;;  %v283_v10 = vadd.f32 %v282_v7, %v216_v62 }
 0x1cb   :  { %v297_v15 = vmax.f32 %v291_v9, 0.0  ;;  %v324_v18 = vmul.f32 %v315_v17, %v296_v12 }
 0x1cc   :  { %v295_v13 = vmax.f32 %v283_v10, 0.0  ;;  %v322_v14 = vmul.f32 %v305_v6, %v294_v8 }
 0x1cd   :  { %v325_v21 = vmul.f32 %v320_v20, %v297_v15 }
 0x1ce   :  { %v323_v16 = vmul.f32 %v310_v11, %v295_v13 }
 0x1d0   :  { %v326_v19 = vadd.f32 %v323_v16, %v322_v14 }
 0x1d2   :  { %v327_v22 = vadd.f32 %v326_v19, %v324_v18 }
 0x1d4   :  { %v328_v23 = vadd.f32 %v327_v22, %v325_v21 }
 0x1d6   :  { %v329_v24 = vrot.slane %v328_v23, 4 }
 0x1d8   :  { %v330_v25 = vadd.f32 %v329_v24, %v328_v23 }
 0x1da   :  { %v331_v26 = vrot.slane %v330_v25, 2 }
 0x1dc   :  { %v332_v27 = vadd.f32 %v331_v26, %v330_v25 }
 0x1de   :  { %v333_v28 = vrot.slane %v332_v27, 1 }
 0x1e0   :  { %v334_v30 = vadd.f32 %v333_v28, %v332_v27 }
 0x1e2   :  { %v337_v31 = vadd.f32 %v336_v29, %v334_v30 }
 0x1e4   :  { %338 = vst [vmem:[#allocation3] sm:$0x1] %v337_v31 }
 0x1e5   :  { %420 = shalt.err (!%p417_p4)
}
 0x1e6   :  { %s421_s24 = scalar_lea.hbm %s572_s7, 16 }
 0x1e7   :  { %p422_p5 = scmp.ne.s32.totalorder %s572_s7, %s421_s24  ;;  %p425_p6 = scmp.lt.u32.totalorder %s421_s24, %s572_s7 }
 0x1e9   :  { %p427_p7 = pnand %p425_p6, %p422_p5 }
 0x1eb   :  { %430 = shalt.err (!%p427_p7)
}
 0x1ec   :  { %348 = dma.vmem_to_hbm [thread:$0]  %s346_s20, 16, %s572_s7, [#allocation4]  }
 0x1ed   :  { %431 = dma.done.wait [#allocation4], 16  }
 0x1ee   :  { %432 = vsyncadd [#allocation4], 4294967280 }
 0x1ef   :  { %352 = vsyncpa [#allocation4], 1 }

</bundles_post_ra>
